<compile_context>
chip_gen: v7x
topology: tpu7x:2x2x1
jax: 0.10.0
libtpu: 0.0.40
codegen_flags: <defaults>
</compile_context>

<pallas_src>
import jax
import jax.numpy as jnp
from jax.experimental import pallas as pl
from jax.experimental.pallas import tpu as pltpu


def _round_up(x, m):
    return (x + m - 1) // m * m


def _reward_kernel(x_ref, w1_ref, b1_ref, w2_ref, b2_ref, o_ref, acc_ref):
    """One (batch-tile, K-tile) grid step.

    grid = (num_batch_tiles, num_k_tiles). The K axis ("arbitrary") reduces
    into the f32 VMEM accumulator; the batch axis ("parallel") is
    megacore-shardable. Partial (ragged) batch blocks are safe: each output
    row depends only on its own input row, and out-of-bounds output lanes are
    discarded at writeback.
    """
    k = pl.program_id(1)

    @pl.when(k == 0)
    def _init():
        acc_ref[...] = jnp.zeros_like(acc_ref)

    # Layer 1 partial product on the MXU. Inputs stay f32 (no bf16 cast);
    # HIGHEST precision keeps parity with the f32 PyTorch reference and its
    # extra MXU passes are hidden behind the HBM-bound x stream.
    acc_ref[...] += jnp.dot(
        x_ref[...], w1_ref[...],
        preferred_element_type=jnp.float32,
        precision=jax.lax.Precision.HIGHEST,
    )

    @pl.when(k == pl.num_programs(1) - 1)
    def _finalize():
        # Bias + ReLU on the VPU.
        h = jnp.maximum(acc_ref[...] + b1_ref[...], 0.0)           # (tb, H_pad)
        # Layer 2 (output width 1): VPU multiply + cross-lane (XLU) reduce,
        # deliberately not an MXU pass. The (tb,) -> (1, tb) relayout also
        # rides the XLU, which has slack (kernel is DMA-bound).
        out = jnp.sum(h * w2_ref[...], axis=-1) + b2_ref[0]        # (tb,)
        o_ref[...] = out[None, :].astype(o_ref.dtype)


def init_params(key, input_dim, hidden_dim):
    """PyTorch nn.Linear default init U[-1/sqrt(fan_in), 1/sqrt(fan_in)],
    weights stored math-order (in_features, out_features)."""
    k1, k2, k3, k4 = jax.random.split(key, 4)
    lim1 = 1.0 / jnp.sqrt(jnp.float32(input_dim))
    lim2 = 1.0 / jnp.sqrt(jnp.float32(hidden_dim))
    w1 = jax.random.uniform(k1, (input_dim, hidden_dim), jnp.float32, -lim1, lim1)
    b1 = jax.random.uniform(k2, (1, hidden_dim), jnp.float32, -lim1, lim1)
    w2 = jax.random.uniform(k3, (hidden_dim, 1), jnp.float32, -lim2, lim2)
    b2 = jax.random.uniform(k4, (1, 1), jnp.float32, -lim2, lim2)
    return w1, b1, w2, b2


def prepare_params(w1, b1, w2, b2):
    """One-time layout prep, hoisted out of the per-forward path.

    Pads the hidden dim to a lane multiple (exact: padded hidden units have
    zero weight AND zero bias, so relu(0) * 0 contributes nothing), keeps
    everything f32, leaves D unpadded, and shapes b2 as a (1,) SMEM scalar.
    Store the returned tuple and reuse it for every forward call.
    """
    D, H = w1.shape
    H_pad = _round_up(H, 128)
    w1p = jnp.zeros((D, H_pad), jnp.float32).at[:, :H].set(
        jnp.asarray(w1, jnp.float32))
    b1p = jnp.zeros((1, H_pad), jnp.float32).at[:, :H].set(
        jnp.asarray(b1, jnp.float32).reshape(1, H))
    w2p = jnp.zeros((1, H_pad), jnp.float32).at[:, :H].set(
        jnp.asarray(w2, jnp.float32).reshape(1, H))
    b2s = jnp.asarray(b2, jnp.float32).reshape((1,))
    return w1p, b1p, w2p, b2s


def reward_model_forward(x, params, *, batch_tile=1024, max_k_tile=1024):
    """x: (B, D) float32 -> logits (B, 1) float32. params = prepare_params(...)."""
    w1p, b1p, w2p, b2s = params
    B, D = x.shape
    assert w1p.shape[0] == D, "x feature dim must match w1"
    H_pad = w1p.shape[1]
    xf = jnp.asarray(x, jnp.float32)           # no padding, no bf16 HBM copy

    # ---- Batch tiling: lane-dense (1, B) output; tb multiple of 128 when
    # tiled; aim for >= 2 grid steps so both v7x TensorCores get work.
    tb = min(_round_up(batch_tile, 128), _round_up(pl.cdiv(B, 2), 128))
    if tb >= B:
        tb = B                                  # single full block (always legal)
    nb = pl.cdiv(B, tb)                         # ragged last block handled by Pallas

    # ---- K (input-feature) tiling so large D never forces all of w1 to be
    # VMEM-resident (v7x 64 MiB). Only exact 128-multiple splits are used;
    # otherwise the whole D stays one block (tk == D == full last dim is legal).
    tk = D
    if D > max_k_tile:
        for cand in (1024, 512, 256, 128):
            if cand <= max_k_tile and D % cand == 0:
                tk = cand
                break
    nk = pl.cdiv(D, tk)

    # ---- Generation-aware VMEM limit (~75% of physical capacity).
    vmem_need = (2 * tb * tk * 4                # x tile, double-buffered, f32
                 + 2 * tk * H_pad * 4           # w1 tile (<= 2 buffers)
                 + 2 * 2 * 8 * H_pad * 4        # b1 + w2 rows, sublane-padded
                 + 2 * 8 * tb * 4               # (1, tb) output tile
                 + tb * H_pad * 4)              # f32 accumulator scratch
    try:
        vmem_cap = int(pltpu.get_tpu_info().vmem_capacity_bytes)
    except Exception:
        vmem_cap = 64 * 1024 * 1024             # conservative (v7x per-core)
    vmem_limit = int(min(max(2 * vmem_need, 32 * 1024 * 1024),
                         int(0.75 * vmem_cap)))

    cost = pl.CostEstimate(
        flops=int(2 * B * D * H_pad + 3 * B * H_pad),
        transcendentals=0,
        bytes_accessed=int(4 * (B * D + D * H_pad + 2 * H_pad + 1 + B)),
    )

    def call(single_buffer_weights):
        # Constant-index weight blocks don't need double-buffering; w1 only
        # qualifies when it is not streamed over K.
        const_pipe = ({"pipeline_mode": pl.Buffered(1)}
                      if single_buffer_weights else {})
        w1_pipe = const_pipe if nk == 1 else {}
        return pl.pallas_call(
            _reward_kernel,
            out_shape=jax.ShapeDtypeStruct((1, B), jnp.float32),
            grid=(nb, nk),
            in_specs=[
                pl.BlockSpec((tb, tk), lambda i, k: (i, k)),            # x stream
                pl.BlockSpec((tk, H_pad), lambda i, k: (k, 0), **w1_pipe),
                pl.BlockSpec((1, H_pad), lambda i, k: (0, 0), **const_pipe),
                pl.BlockSpec((1, H_pad), lambda i, k: (0, 0), **const_pipe),
                pl.BlockSpec(memory_space=pltpu.MemorySpace.SMEM),      # b2 scalar
            ],
            out_specs=pl.BlockSpec((1, tb), lambda i, k: (0, i)),       # lane-dense
            scratch_shapes=[pltpu.VMEM((tb, H_pad), jnp.float32)],
            compiler_params=pltpu.CompilerParams(
                dimension_semantics=("parallel", "arbitrary"),
                vmem_limit_bytes=vmem_limit,
            ),
            cost_estimate=cost,
        )(xf, w1p, b1p, w2p, b2s)

    try:
        out_row = call(True)
    except Exception:
        # Fallback for jax versions that reject single-buffered BlockSpecs.
        out_row = call(False)

    # Layout plumbing only: (1, B) lane-dense row -> (B, 1) logits.
    return out_row[0].reshape(B, 1)


if __name__ == "__main__":
    INPUT_DIM, HIDDEN_DIM = 32, 32
    key = jax.random.PRNGKey(0)
    kp, kx1, kx2 = jax.random.split(key, 3)

    w1, b1, w2, b2 = init_params(kp, INPUT_DIM, HIDDEN_DIM)
    params = prepare_params(w1, b1, w2, b2)     # hoisted: done once, reused

    def reference(x):
        h = jnp.maximum(
            jnp.dot(x, w1, precision=jax.lax.Precision.HIGHEST) + b1, 0.0)
        return jnp.dot(h, w2, precision=jax.lax.Precision.HIGHEST) + b2

    ATOL = RTOL = 1e-4   # f32 end-to-end (no bf16 casts) -> tight tolerance

    # Single-tile path (grid (1, 1)).
    B1 = 8
    x1 = jax.random.normal(kx1, (B1, INPUT_DIM), jnp.float32)
    out1 = reward_model_forward(x1, params)
    jax.block_until_ready(out1)
    ref1 = reference(x1)
    assert out1.shape == (B1, 1)
    assert jnp.allclose(out1, ref1, atol=ATOL, rtol=RTOL)

    # Multi-tile path: 2 "parallel" batch steps with a ragged last block
    # (384 rows over a 256-row tile) -> exercises partial-block handling and
    # the megacore-shardable grid.
    B2 = 384
    x2 = jax.random.normal(kx2, (B2, INPUT_DIM), jnp.float32)
    out2 = reward_model_forward(x2, params)
    jax.block_until_ready(out2)
    ref2 = reference(x2)
    assert out2.shape == (B2, 1)
    assert jnp.allclose(out2, ref2, atol=ATOL, rtol=RTOL)

    print("KERNEL_OK")
</pallas_src>

<mosaic_0001>
module attributes {stable_mosaic.version = 11 : i64} {
  func.func @_reward_kernel(%arg0: i32, %arg1: i32, %arg2: memref<8x32xf32, #tpu.memory_space<vmem>>, %arg3: memref<32x128xf32, #tpu.memory_space<vmem>>, %arg4: memref<1x128xf32, #tpu.memory_space<vmem>>, %arg5: memref<1x128xf32, #tpu.memory_space<vmem>>, %arg6: memref<1xf32, #tpu.memory_space<smem>>, %arg7: memref<1x8xf32, #tpu.memory_space<vmem>>, %arg8: memref<8x128xf32, #tpu.memory_space<vmem>>) attributes {dimension_semantics = [#tpu.dimension_semantics<parallel>, #tpu.dimension_semantics<arbitrary>], iteration_bounds = array<i64: 1, 1>, scalar_prefetch = 0 : i64, scratch_operands = 1 : i64, tpu.core_type = #tpu.core_type<tc>, window_params = [{transform_indices = @transform_0, window_bounds = array<i64: 8, 32>}, {pipeline_mode = #tpu.pipeline_mode<synchronous>, transform_indices = @transform_1, window_bounds = array<i64: 32, 128>}, {pipeline_mode = #tpu.pipeline_mode<synchronous>, transform_indices = @transform_2, window_bounds = array<i64: 1, 128>}, {pipeline_mode = #tpu.pipeline_mode<synchronous>, transform_indices = @transform_3, window_bounds = array<i64: 1, 128>}, {transform_indices = @transform_4, window_bounds = array<i64: 1>}, {transform_indices = @transform_5, window_bounds = array<i64: 1, 8>}]} {
    %c0_i32 = arith.constant 0 : i32
    %0 = arith.cmpi eq, %arg1, %c0_i32 : i32
    %1 = arith.extui %0 : i1 to i32
    %c0_i32_0 = arith.constant 0 : i32
    %2 = arith.cmpi ne, %1, %c0_i32_0 : i32
    scf.if %2 {
      %cst_10 = arith.constant 0.000000e+00 : f32
      %12 = vector.broadcast %cst_10 : f32 to vector<8x128xf32>
      %c0_11 = arith.constant 0 : index
      %c0_12 = arith.constant 0 : index
      %13 = vector.load %arg8[%c0_11, %c0_12] : memref<8x128xf32, #tpu.memory_space<vmem>>, vector<8x128xf32>
      tpu.vector_store %arg8[%c0_11, %c0_12], %12 {strides = array<i32>} : memref<8x128xf32, #tpu.memory_space<vmem>>, vector<8x128xf32>,
    } else {
    }
    %c0 = arith.constant 0 : index
    %c0_1 = arith.constant 0 : index
    %3 = vector.load %arg8[%c0, %c0_1] : memref<8x128xf32, #tpu.memory_space<vmem>>, vector<8x128xf32>
    %c0_2 = arith.constant 0 : index
    %c0_3 = arith.constant 0 : index
    %4 = vector.load %arg2[%c0_2, %c0_3] : memref<8x32xf32, #tpu.memory_space<vmem>>, vector<8x32xf32>
    %c0_4 = arith.constant 0 : index
    %c0_5 = arith.constant 0 : index
    %5 = vector.load %arg3[%c0_4, %c0_5] : memref<32x128xf32, #tpu.memory_space<vmem>>, vector<32x128xf32>
    %cst = arith.constant dense<0.000000e+00> : vector<8x128xf32>
    %6 = tpu.matmul %4, %5, %cst {dimension_numbers = #tpu.dot_dimension_numbers<[1], [0], [0], [1], [0, 0, 1, 1], [], []>, precision = #tpu.contract_precision<fp32>} : vector<8x32xf32>, vector<32x128xf32>, vector<8x128xf32> -> vector<8x128xf32>
    %7 = arith.addf %3, %6 : vector<8x128xf32>
    %c0_6 = arith.constant 0 : index
    %c0_7 = arith.constant 0 : index
    %8 = vector.load %arg8[%c0_6, %c0_7] : memref<8x128xf32, #tpu.memory_space<vmem>>, vector<8x128xf32>
    tpu.vector_store %arg8[%c0_6, %c0_7], %7 {strides = array<i32>} : memref<8x128xf32, #tpu.memory_space<vmem>>, vector<8x128xf32>,
    %c0_i32_8 = arith.constant 0 : i32
    %9 = arith.cmpi eq, %arg1, %c0_i32_8 : i32
    %10 = arith.extui %9 : i1 to i32
    %c0_i32_9 = arith.constant 0 : i32
    %11 = arith.cmpi ne, %10, %c0_i32_9 : i32
    scf.if %11 {
      %c0_10 = arith.constant 0 : index
      %c0_11 = arith.constant 0 : index
      %12 = vector.load %arg8[%c0_10, %c0_11] : memref<8x128xf32, #tpu.memory_space<vmem>>, vector<8x128xf32>
      %c0_12 = arith.constant 0 : index
      %c0_13 = arith.constant 0 : index
      %13 = vector.load %arg4[%c0_12, %c0_13] : memref<1x128xf32, #tpu.memory_space<vmem>>, vector<1x128xf32>
      %14 = vector.broadcast %13 : vector<1x128xf32> to vector<8x128xf32>
      %15 = arith.addf %12, %14 : vector<8x128xf32>
      %cst_14 = arith.constant 0.000000e+00 : f32
      %16 = vector.broadcast %cst_14 : f32 to vector<8x128xf32>
      %17 = arith.maximumf %15, %16 : vector<8x128xf32>
      %c0_15 = arith.constant 0 : index
      %c0_16 = arith.constant 0 : index
      %18 = vector.load %arg5[%c0_15, %c0_16] : memref<1x128xf32, #tpu.memory_space<vmem>>, vector<1x128xf32>
      %19 = vector.broadcast %18 : vector<1x128xf32> to vector<8x128xf32>
      %20 = arith.mulf %17, %19 : vector<8x128xf32>
      %cst_17 = arith.constant dense<0.000000e+00> : vector<8xf32>
      %21 = vector.multi_reduction <add>, %20, %cst_17 [1] : vector<8x128xf32> to vector<8xf32>
      %c0_18 = arith.constant 0 : index
      %22 = memref.load %arg6[%c0_18] : memref<1xf32, #tpu.memory_space<smem>>
      %23 = vector.broadcast %22 : f32 to vector<8xf32>
      %24 = arith.addf %21, %23 : vector<8xf32>
      %25 = vector.shape_cast %24 : vector<8xf32> to vector<1x8xf32>
      %c0_19 = arith.constant 0 : index
      %c0_20 = arith.constant 0 : index
      %26 = vector.load %arg7[%c0_19, %c0_20] : memref<1x8xf32, #tpu.memory_space<vmem>>, vector<1x8xf32>
      tpu.vector_store %arg7[%c0_19, %c0_20], %25 {strides = array<i32>} : memref<1x8xf32, #tpu.memory_space<vmem>>, vector<1x8xf32>,
    } else {
    }
    return
  }
  func.func @transform_0(%arg0: i32, %arg1: i32) -> (i32, i32) {
    %c0_i32 = arith.constant 0 : i32
    return %arg0, %arg1 : i32, i32
  }
  func.func @transform_1(%arg0: i32, %arg1: i32) -> (i32, i32) {
    %c0_i32 = arith.constant 0 : i32
    %c0_i32_0 = arith.constant 0 : i32
    return %arg1, %c0_i32 : i32, i32
  }
  func.func @transform_2(%arg0: i32, %arg1: i32) -> (i32, i32) {
    %c0_i32 = arith.constant 0 : i32
    %c0_i32_0 = arith.constant 0 : i32
    %c0_i32_1 = arith.constant 0 : i32
    return %c0_i32, %c0_i32_0 : i32, i32
  }
  func.func @transform_3(%arg0: i32, %arg1: i32) -> (i32, i32) {
    %c0_i32 = arith.constant 0 : i32
    %c0_i32_0 = arith.constant 0 : i32
    %c0_i32_1 = arith.constant 0 : i32
    return %c0_i32, %c0_i32_0 : i32, i32
  }
  func.func @transform_4(%arg0: i32, %arg1: i32) -> i32 {
    %c0_i32 = arith.constant 0 : i32
    %c0_i32_0 = arith.constant 0 : i32
    return %c0_i32 : i32
  }
  func.func @transform_5(%arg0: i32, %arg1: i32) -> (i32, i32) {
    %c0_i32 = arith.constant 0 : i32
    %c0_i32_0 = arith.constant 0 : i32
    return %c0_i32, %arg0 : i32, i32
  }
}

module attributes {stable_mosaic.version = 11 : i64} {
  func.func @_reward_kernel(%arg0: i32, %arg1: i32, %arg2: memref<8x32xf32, #tpu.memory_space<vmem>>, %arg3: memref<32x128xf32, #tpu.memory_space<vmem>>, %arg4: memref<1x128xf32, #tpu.memory_space<vmem>>, %arg5: memref<1x128xf32, #tpu.memory_space<vmem>>, %arg6: memref<1xf32, #tpu.memory_space<smem>>, %arg7: memref<1x8xf32, #tpu.memory_space<vmem>>, %arg8: memref<8x128xf32, #tpu.memory_space<vmem>>) attributes {dimension_semantics = [#tpu.dimension_semantics<parallel>, #tpu.dimension_semantics<arbitrary>], iteration_bounds = array<i64: 1, 1>, scalar_prefetch = 0 : i64, scratch_operands = 1 : i64, tpu.core_type = #tpu.core_type<tc>, window_params = [{transform_indices = @transform_0, window_bounds = array<i64: 8, 32>}, {transform_indices = @transform_1, window_bounds = array<i64: 32, 128>}, {pipeline_mode = #tpu.pipeline_mode<synchronous>, transform_indices = @transform_2, window_bounds = array<i64: 1, 128>}, {pipeline_mode = #tpu.pipeline_mode<synchronous>, transform_indices = @transform_3, window_bounds = array<i64: 1, 128>}, {transform_indices = @transform_4, window_bounds = array<i64: 1>}, {transform_indices = @transform_5, window_bounds = array<i64: 1, 8>}]} {
    %c0_i32 = arith.constant 0 : i32
    %0 = arith.cmpi eq, %arg1, %c0_i32 : i32
    %1 = arith.extui %0 : i1 to i32
    %c0_i32_0 = arith.constant 0 : i32
    %2 = arith.cmpi ne, %1, %c0_i32_0 : i32
    scf.if %2 {
      %cst_10 = arith.constant 0.000000e+00 : f32
      %12 = vector.broadcast %cst_10 : f32 to vector<8x128xf32>
      %c0_11 = arith.constant 0 : index
      %c0_12 = arith.constant 0 : index
      %13 = vector.load %arg8[%c0_11, %c0_12] : memref<8x128xf32, #tpu.memory_space<vmem>>, vector<8x128xf32>
      tpu.vector_store %arg8[%c0_11, %c0_12], %12 {strides = array<i32>} : memref<8x128xf32, #tpu.memory_space<vmem>>, vector<8x128xf32>,
    } else {
    }
    %c0 = arith.constant 0 : index
    %c0_1 = arith.constant 0 : index
    %3 = vector.load %arg8[%c0, %c0_1] : memref<8x128xf32, #tpu.memory_space<vmem>>, vector<8x128xf32>
    %c0_2 = arith.constant 0 : index
    %c0_3 = arith.constant 0 : index
    %4 = vector.load %arg2[%c0_2, %c0_3] : memref<8x32xf32, #tpu.memory_space<vmem>>, vector<8x32xf32>
    %c0_4 = arith.constant 0 : index
    %c0_5 = arith.constant 0 : index
    %5 = vector.load %arg3[%c0_4, %c0_5] : memref<32x128xf32, #tpu.memory_space<vmem>>, vector<32x128xf32>
    %cst = arith.constant dense<0.000000e+00> : vector<8x128xf32>
    %6 = tpu.matmul %4, %5, %cst {dimension_numbers = #tpu.dot_dimension_numbers<[1], [0], [0], [1], [0, 0, 1, 1], [], []>, precision = #tpu.contract_precision<fp32>} : vector<8x32xf32>, vector<32x128xf32>, vector<8x128xf32> -> vector<8x128xf32>
    %7 = arith.addf %3, %6 : vector<8x128xf32>
    %c0_6 = arith.constant 0 : index
    %c0_7 = arith.constant 0 : index
    %8 = vector.load %arg8[%c0_6, %c0_7] : memref<8x128xf32, #tpu.memory_space<vmem>>, vector<8x128xf32>
    tpu.vector_store %arg8[%c0_6, %c0_7], %7 {strides = array<i32>} : memref<8x128xf32, #tpu.memory_space<vmem>>, vector<8x128xf32>,
    %c0_i32_8 = arith.constant 0 : i32
    %9 = arith.cmpi eq, %arg1, %c0_i32_8 : i32
    %10 = arith.extui %9 : i1 to i32
    %c0_i32_9 = arith.constant 0 : i32
    %11 = arith.cmpi ne, %10, %c0_i32_9 : i32
    scf.if %11 {
      %c0_10 = arith.constant 0 : index
      %c0_11 = arith.constant 0 : index
      %12 = vector.load %arg8[%c0_10, %c0_11] : memref<8x128xf32, #tpu.memory_space<vmem>>, vector<8x128xf32>
      %c0_12 = arith.constant 0 : index
      %c0_13 = arith.constant 0 : index
      %13 = vector.load %arg4[%c0_12, %c0_13] : memref<1x128xf32, #tpu.memory_space<vmem>>, vector<1x128xf32>
      %14 = vector.broadcast %13 : vector<1x128xf32> to vector<8x128xf32>
      %15 = arith.addf %12, %14 : vector<8x128xf32>
      %cst_14 = arith.constant 0.000000e+00 : f32
      %16 = vector.broadcast %cst_14 : f32 to vector<8x128xf32>
      %17 = arith.maximumf %15, %16 : vector<8x128xf32>
      %c0_15 = arith.constant 0 : index
      %c0_16 = arith.constant 0 : index
      %18 = vector.load %arg5[%c0_15, %c0_16] : memref<1x128xf32, #tpu.memory_space<vmem>>, vector<1x128xf32>
      %19 = vector.broadcast %18 : vector<1x128xf32> to vector<8x128xf32>
      %20 = arith.mulf %17, %19 : vector<8x128xf32>
      %cst_17 = arith.constant dense<0.000000e+00> : vector<8xf32>
      %21 = vector.multi_reduction <add>, %20, %cst_17 [1] : vector<8x128xf32> to vector<8xf32>
      %c0_18 = arith.constant 0 : index
      %22 = memref.load %arg6[%c0_18] : memref<1xf32, #tpu.memory_space<smem>>
      %23 = vector.broadcast %22 : f32 to vector<8xf32>
      %24 = arith.addf %21, %23 : vector<8xf32>
      %25 = vector.shape_cast %24 : vector<8xf32> to vector<1x8xf32>
      %c0_19 = arith.constant 0 : index
      %c0_20 = arith.constant 0 : index
      %26 = vector.load %arg7[%c0_19, %c0_20] : memref<1x8xf32, #tpu.memory_space<vmem>>, vector<1x8xf32>
      tpu.vector_store %arg7[%c0_19, %c0_20], %25 {strides = array<i32>} : memref<1x8xf32, #tpu.memory_space<vmem>>, vector<1x8xf32>,
    } else {
    }
    return
  }
  func.func @transform_0(%arg0: i32, %arg1: i32) -> (i32, i32) {
    %c0_i32 = arith.constant 0 : i32
    return %arg0, %arg1 : i32, i32
  }
  func.func @transform_1(%arg0: i32, %arg1: i32) -> (i32, i32) {
    %c0_i32 = arith.constant 0 : i32
    %c0_i32_0 = arith.constant 0 : i32
    return %arg1, %c0_i32 : i32, i32
  }
  func.func @transform_2(%arg0: i32, %arg1: i32) -> (i32, i32) {
    %c0_i32 = arith.constant 0 : i32
    %c0_i32_0 = arith.constant 0 : i32
    %c0_i32_1 = arith.constant 0 : i32
    return %c0_i32, %c0_i32_0 : i32, i32
  }
  func.func @transform_3(%arg0: i32, %arg1: i32) -> (i32, i32) {
    %c0_i32 = arith.constant 0 : i32
    %c0_i32_0 = arith.constant 0 : i32
    %c0_i32_1 = arith.constant 0 : i32
    return %c0_i32, %c0_i32_0 : i32, i32
  }
  func.func @transform_4(%arg0: i32, %arg1: i32) -> i32 {
    %c0_i32 = arith.constant 0 : i32
    %c0_i32_0 = arith.constant 0 : i32
    return %c0_i32 : i32
  }
  func.func @transform_5(%arg0: i32, %arg1: i32) -> (i32, i32) {
    %c0_i32 = arith.constant 0 : i32
    %c0_i32_0 = arith.constant 0 : i32
    return %c0_i32, %arg0 : i32, i32
  }
}

</mosaic_0001>

<bundles_post_ra>
// kernel: tpu_custom_call.1
= control target key start
LH: loop header
LB: loop body
LE: loop exit
PB: predicated region body
PF: predicated region fallthrough
CT: control target
= control target key end

     0   :  { %11 = vsyncpa [#allocation5], 0  ;;  %s930_s0 = inlined_call_operand.hbm [shape: f32[8,32], index: 0, kind: input, shape index: {}]   ;;  %s931_s1 = inlined_call_operand.hbm [shape: f32[32,128], index: 1, kind: input, shape index: {}]   ;;  %s932_s2 = inlined_call_operand.vmem [shape: f32[1,128], index: 2, kind: input, shape index: {}]   ;;  %s933_s3 = inlined_call_operand.vmem [shape: f32[1,128], index: 3, kind: input, shape index: {}]   ;;  %s934_s4 = inlined_call_operand.<no memory space> [shape: f32[1], index: 4, kind: input, shape index: {}]   ;;  %s935_s5 = inlined_call_operand.hbm [shape: f32[1,8], index: 5, kind: output, shape index: {}]  }
   0x1   :  { %12 = vsyncpa [#allocation8], 0 }
   0x2   :  { %13 = vsyncpa [#allocation6], 0  ;;  %s816_s18 = smov [#allocation4]   ;;  %s817_s20 = smov [#allocation7]  }
   0x3   :  { %s20_s19 = sshll.u32 %s816_s18, 4  ;;  %s29_s21 = sshll.u32 %s817_s20, 4  ;;  %s21_s19 = int_to_ptr.vmem [resolvable:$true] %s20_s19  ;;  %s854_s21 = int_to_ptr.vmem [resolvable:$true] %s29_s21 }
   0x4   :  { %s744_s24 = scalar_lea.hbm %s930_s0, 128 }
   0x5   :  { %p745_p0 = scmp.ne.s32.totalorder %s930_s0, %s744_s24  ;;  %p748_p1 = scmp.lt.u32.totalorder %s744_s24, %s930_s0 }
   0x7   :  { %p750_p2 = pnand %p748_p1, %p745_p0 }
   0x9   :  { %753 = shalt.err (!%p750_p2)
}
   0xa   :  { %s754_s29 = scalar_lea.vmem %s21_s19, 128  ;;  %p759_p4 = scmp.lt.s32.totalorder %s21_s19, %s21_s19 }
   0xb   :  { %p755_p3 = scmp.ne.s32.totalorder %s21_s19, %s754_s29  ;;  %p760_p5 = scmp.lt.s32.totalorder %s754_s29, %s754_s29 }
   0xd   :  { %p761_p6 = por %p760_p5, %p759_p4 }
   0xf   :  { %p762_p7 = pnand %p761_p6, %p755_p3 }
  0x11   :  { %765 = shalt.err (!%p762_p7)
}
  0x12   :  { %23 = dma.hbm_to_vmem [thread:$0]  %s930_s0, 128, %s21_s19, [#allocation5]  }
  0x13   :  { %s766_s9 = scalar_lea.hbm %s931_s1, 512 }
  0x14   :  { %p767_p8 = scmp.ne.s32.totalorder %s931_s1, %s766_s9  ;;  %p770_p9 = scmp.lt.u32.totalorder %s766_s9, %s931_s1 }
  0x16   :  { %p772_p10 = pnand %p770_p9, %p767_p8 }
  0x18   :  { %775 = shalt.err (!%p772_p10)
}
  0x19   :  { %s776_s14 = scalar_lea.vmem %s854_s21, 512  ;;  %p781_p12 = scmp.lt.s32.totalorder %s854_s21, %s854_s21 }
  0x1a   :  { %p777_p11 = scmp.ne.s32.totalorder %s854_s21, %s776_s14  ;;  %p782_p13 = scmp.lt.s32.totalorder %s776_s14, %s776_s14 }
  0x1c   :  { %p783_p0 = por %p782_p13, %p781_p12 }
  0x1e   :  { %p784_p1 = pnand %p783_p0, %p777_p11 }
  0x20   :  { %787 = shalt.err (!%p784_p1)
}
  0x21   :  { %s818_s0 = smov 128   ;;  %s819_s15 = smov 8  }
  0x22   :  { %35 = dma.hbm_to_vmem [thread:$0]  %s931_s1, 512, %s854_s21, [#allocation8], %s818_s0, %s818_s0, %s819_s15  }
  0x23   :  { %810 = dma.done.wait [#allocation5], 128  }
  0x24   :  { %811 = vsyncadd [#allocation5], 4294967168 }
  0x25   :  { %812 = dma.done.wait [#allocation8], 512  }
  0x26   :  { %813 = vsyncadd [#allocation8], 4294966784  ;;  %v820_v0 = vmov 0.0|0.0   ;;  %vm821_vm0 = vmmov 0   ;;  %v822_v1 = vmov 0.0   ;;  %vm59_vm1 = vcmask 261120  }
  0x27   :  { %700 = vmatprep.subr.bf16.mxu0 %v820_v0  ;;  %706 = vmatprep.subr.bf16.mxu1 %v820_v0  ;;  %v55_v2 = vld [vmem:[#allocation7] sm:$0xff]  ;;  %v56_v3 = vld [vmem:[#allocation7 + $0x8] sm:$0xff]  ;;  %v57_v4 = vld [vmem:[#allocation7 + $0x10] sm:$0xff]  ;;  %v577_v63 = vlaneseq  ;;  %vm584_vm2 = vcmask 57344  }
  0x28   :  { %642 = vmatprep.mubr.msk.f32.mxu0 %vm821_vm0, %v822_v1  ;;  %653 = vmatprep.mubr.msk.f32.mxu1 %vm821_vm0, %v822_v1  ;;  %v64_v5 = vand.u32 4294901760, %v55_v2  ;;  %v67_v6 = vand.u32 4294901760, %v56_v3  ;;  %v58_v7 = vld [vmem:[#allocation7 + $0x18] sm:$0xff]  ;;  %v70_v8 = vand.u32 4294901760, %v57_v4 }
  0x29   :  { %v54_v9 = vld [vmem:[#allocation4] sm:$0xff]  ;;  %v73_v10 = vand.u32 4294901760, %v58_v7 }
  0x2a   :  { %v61_v11 = vsel %vm59_vm1, %v54_v9, 0  ;;  %v701_v12 = vpack.c.bf16 %v67_v6, %v64_v5  ;;  %v144_v13 = vsub.f32 %v55_v2, %v64_v5  ;;  %v151_v14 = vsub.f32 %v56_v3, %v67_v6  ;;  %v602_v56 = vld [vmem:[%s932_s2] ss:$0 sm:$0xff]  ;;  %s823_s2 = smov [#allocation9]  }
  0x2b   :  { %v158_v15 = vsub.f32 %v57_v4, %v70_v8  ;;  %v165_v16 = vsub.f32 %v58_v7, %v73_v10  ;;  %v132_v17 = vand.u32 4294901760, %v61_v11  ;;  %v704_v18 = vpack.c.bf16 %v73_v10, %v70_v8  ;;  %v603_v60 = vld [vmem:[%s933_s3] ss:$0 sm:$0xff]  ;;  %s592_s23 = sshll.u32 %s823_s2, 4  ;;  %s593_s23 = int_to_ptr.vmem [resolvable:$true] %s592_s23 }
  0x2c   :  { %702 = vmatpush3.bf16.msra.mxu0 %v701_v12  ;;  %v145_v19 = vand.u32 4294901760, %v144_v13  ;;  %v152_v20 = vand.u32 4294901760, %v151_v14  ;;  %v713_v35 = vpack.c.bf16 %v151_v14, %v144_v13  ;;  %v574_v2 = vstv %s934_s4  ;;  %s788_s3 = scalar_lea.vmem %s593_s23, 16  ;;  %s792_s24 = scalar_lea.vmem %s593_s23, 32 }
  0x2d   :  { %v159_v21 = vand.u32 4294901760, %v158_v15  ;;  %703 = vmatprep.subr.bf16.mxu0 %v820_v0  ;;  %v133_v22 = vsub.f32 %v61_v11, %v132_v17  ;;  %v166_v23 = vand.u32 4294901760, %v165_v16  ;;  %v716_v38 = vpack.c.bf16 %v165_v16, %v158_v15  ;;  %p789_p2 = scmp.ne.s32.totalorder %s593_s23, %s788_s3  ;;  %p793_p3 = scmp.lt.s32.totalorder %s593_s23, %s593_s23 }
  0x2e   :  { %v146_v24 = vsub.f32 %v144_v13, %v145_v19  ;;  %v153_v25 = vsub.f32 %v151_v14, %v152_v20  ;;  %v725_v39 = vpack.c.bf16 %v152_v20, %v145_v19  ;;  %p794_p4 = scmp.lt.s32.totalorder %s792_s24, %s788_s3 }
  0x2f   :  { %v160_v26 = vsub.f32 %v158_v15, %v159_v21  ;;  %v134_v27 = vand.u32 4294901760, %v133_v22  ;;  %v167_v28 = vsub.f32 %v165_v16, %v166_v23  ;;  %v728_v40 = vpack.c.bf16 %v166_v23, %v159_v21 }
  0x30   :  { %705 = vmatpush3.bf16.msra.mxu0 %v704_v18  ;;  %v147_v29 = vand.u32 4294901760, %v146_v24  ;;  %v154_v30 = vand.u32 4294901760, %v153_v25  ;;  %p795_p5 = por %p794_p4, %p793_p3 }
  0x31   :  { %v161_v31 = vand.u32 4294901760, %v160_v26  ;;  %712 = vmatprep.subr.bf16.mxu0 %v820_v0  ;;  %v135_v32 = vsub.f32 %v133_v22, %v134_v27  ;;  %v168_v33 = vand.u32 4294901760, %v167_v28 }
  0x32   :  { %v707_v34 = vpack.c.bf16 %v154_v30, %v147_v29  ;;  %p796_p6 = pnand %p795_p5, %p789_p2 }
  0x33   :  { %v136_v36 = vand.u32 4294901760, %v135_v32  ;;  %v710_v37 = vpack.c.bf16 %v168_v33, %v161_v31 }
  0x34   :  { %708 = vmatpush3.bf16.msra.mxu1 %v707_v34 }
  0x35   :  { %643 = vmatmul.mubr.f32.vlgmr.msra.gmra.mrb[0].mxu0 %v136_v36  ;;  %709 = vmatprep.subr.bf16.mxu1 %v820_v0 }
  0x36   :  { %714 = vmatpush3.bf16.msra.mxu0 %v713_v35  ;;  %664 = vmatprep.mubr.msk.f32.mxu0 %vm821_vm0, %v822_v1 }
  0x37   :  { %715 = vmatprep.subr.bf16.mxu0 %v820_v0 }
  0x38   :  { %711 = vmatpush3.bf16.msra.mxu1 %v710_v37 }
  0x39   :  { %718 = vmatprep.subr.bf16.mxu1 %v820_v0 }
  0x3a   :  { %717 = vmatpush3.bf16.msra.mxu0 %v716_v38 }
  0x3b   :  { %654 = vmatmul.mubr.f32.vlgmr.msra.gmra.mrb[0].mxu1 %v132_v17  ;;  %724 = vmatprep.subr.bf16.mxu0 %v820_v0 }
  0x3c   :  { %720 = vmatpush3.bf16.msra.mxu1 %v701_v12  ;;  %675 = vmatprep.mubr.msk.f32.mxu1 %vm821_vm0, %v822_v1 }
  0x3d   :  { %665 = vmatmul.mubr.f32.vlgmr.msra.gmra.mrb[2].mxu0 %v133_v22  ;;  %721 = vmatprep.subr.bf16.mxu1 %v820_v0 }
  0x3e   :  { %726 = vmatpush3.bf16.msra.mxu0 %v725_v39  ;;  %686 = vmatprep.mubr.msk.f32.mxu0 %vm821_vm0, %v822_v1 }
  0x3f   :  { %727 = vmatprep.subr.bf16.mxu0 %v820_v0 }
  0x40   :  { %723 = vmatpush3.bf16.msra.mxu1 %v704_v18 }
  0x41   :  { %730 = vmatprep.subr.bf16.mxu1 %v820_v0 }
  0x42   :  { %729 = vmatpush3.bf16.msra.mxu0 %v728_v40 }
  0x43   :  { %676 = vmatmul.mubr.f32.vlgmr.msra.gmra.mrb[2].mxu1 %v134_v27 }
  0x44   :  { %732 = vmatpush3.bf16.msra.mxu1 %v701_v12  ;;  %697 = vmatprep.mubr.msk.f32.mxu1 %vm821_vm0, %v822_v1  ;;  %v580_v1 = vshrl.u32 %v577_v63, 7 }
  0x45   :  { %687 = vmatmul.mubr.f32.vlgmr.msra.gmra.mrb[4].mxu0 %v132_v17  ;;  %733 = vmatprep.subr.bf16.mxu1 %v820_v0  ;;  %v578_v0 = vand.u32 127, %v577_v63 }
  0x47   :  { %v581_v3 = vsub.s32 %v578_v0, %v580_v1 }
  0x48   :  { %735 = vmatpush3.bf16.msra.mxu1 %v704_v18 }
  0x4b   :  { %698 = vmatmul.mubr.f32.vlgmr.msra.gmra.mrb[4].mxu1 %v132_v17 }
 0x108   :  { %v138_v41 = vpop.f32.mrb[0].mxu0 }
 0x109   :  { %v644_v42 = vpop.f32.mrb[1].mxu0 }
 0x10e   :  { %v229_v43 = vpop.f32.mrb[0].mxu1 }
 0x10f   :  { %v230_v44 = vadd.f32 %v229_v43, %v138_v41  ;;  %v655_v45 = vpop.f32.mrb[1].mxu1 }
 0x110   :  { %v309_v46 = vpop.f32.mrb[2].mxu0 }
 0x111   :  { %v310_v47 = vadd.f32 %v309_v46, %v230_v44  ;;  %v666_v48 = vpop.f32.mrb[3].mxu0 }
 0x116   :  { %v386_v49 = vpop.f32.mrb[2].mxu1 }
 0x117   :  { %v387_v50 = vadd.f32 %v386_v49, %v310_v47  ;;  %v677_v51 = vpop.f32.mrb[3].mxu1 }
 0x118   :  { %v469_v52 = vpop.f32.mrb[4].mxu0 }
 0x119   :  { %v470_v53 = vadd.f32 %v469_v52, %v387_v50  ;;  %v688_v54 = vpop.f32.mrb[5].mxu0 }
 0x11e   :  { %v544_v55 = vpop.f32.mrb[4].mxu1 }
 0x11f   :  { %v545_v57 = vadd.f32 %v544_v55, %v470_v53  ;;  %v699_v58 = vpop.f32.mrb[5].mxu1 }
 0x121   :  { %v561_v59 = vadd.f32 %v602_v56, %v545_v57 }
 0x123   :  { %v562_v61 = vmax.f32 %v561_v59, 0.0 }
 0x125   :  { %v570_v62 = vmul.f32 %v603_v60, %v562_v61 }
 0x127   :  { %571 = vadd.xlane.f32.xlu0 %v570_v62 }
 0x1b4   :  { %v572_v4 = vpop.xlane.xlu0 %571 }
 0x1b5   :  { %v575_v5 = vadd.f32 %v574_v2, %v572_v4 }
 0x1b7   :  { %v582_v6 = vrot.slane %v575_v5, %v581_v3 }
 0x1b9   :  { %585 = vst.msk [vmem:[#allocation9] sm:$0x1] %vm584_vm2, %v582_v6 }
 0x1ba   :  { %799 = shalt.err (!%p796_p6)
}
 0x1bb   :  { %s800_s4 = scalar_lea.hbm %s935_s5, 16 }
 0x1bc   :  { %p801_p7 = scmp.ne.s32.totalorder %s935_s5, %s800_s4  ;;  %p804_p8 = scmp.lt.u32.totalorder %s800_s4, %s935_s5 }
 0x1be   :  { %p806_p9 = pnand %p804_p8, %p801_p7 }
 0x1c0   :  { %809 = shalt.err (!%p806_p9)
}
 0x1c1   :  { %595 = dma.vmem_to_hbm [thread:$0]  %s593_s23, 16, %s935_s5, [#allocation6]  }
 0x1c2   :  { %814 = dma.done.wait [#allocation6], 16  }
 0x1c3   :  { %815 = vsyncadd [#allocation6], 4294967280 }
 0x1c4   :  { %599 = vsyncpa [#allocation5], 1 }
 0x1c5   :  { %600 = vsyncpa [#allocation8], 1 }
 0x1c6   :  { %601 = vsyncpa [#allocation6], 1 }

// kernel: tpu_custom_call.1
= control target key start
LH: loop header
LB: loop body
LE: loop exit
PB: predicated region body
PF: predicated region fallthrough
CT: control target
= control target key end

     0   :  { %11 = vsyncpa [#allocation5], 0  ;;  %s930_s0 = inlined_call_operand.hbm [shape: f32[8,32], index: 0, kind: input, shape index: {}]   ;;  %s931_s1 = inlined_call_operand.hbm [shape: f32[32,128], index: 1, kind: input, shape index: {}]   ;;  %s932_s2 = inlined_call_operand.vmem [shape: f32[1,128], index: 2, kind: input, shape index: {}]   ;;  %s933_s3 = inlined_call_operand.vmem [shape: f32[1,128], index: 3, kind: input, shape index: {}]   ;;  %s934_s4 = inlined_call_operand.<no memory space> [shape: f32[1], index: 4, kind: input, shape index: {}]   ;;  %s935_s5 = inlined_call_operand.hbm [shape: f32[1,8], index: 5, kind: output, shape index: {}]  }
   0x1   :  { %12 = vsyncpa [#allocation8], 0 }
   0x2   :  { %13 = vsyncpa [#allocation6], 0  ;;  %s816_s18 = smov [#allocation4]   ;;  %s817_s20 = smov [#allocation7]  }
   0x3   :  { %s20_s19 = sshll.u32 %s816_s18, 4  ;;  %s29_s21 = sshll.u32 %s817_s20, 4  ;;  %s21_s19 = int_to_ptr.vmem [resolvable:$true] %s20_s19  ;;  %s854_s21 = int_to_ptr.vmem [resolvable:$true] %s29_s21 }
   0x4   :  { %s744_s24 = scalar_lea.hbm %s930_s0, 128 }
   0x5   :  { %p745_p0 = scmp.ne.s32.totalorder %s930_s0, %s744_s24  ;;  %p748_p1 = scmp.lt.u32.totalorder %s744_s24, %s930_s0 }
   0x7   :  { %p750_p2 = pnand %p748_p1, %p745_p0 }
   0x9   :  { %753 = shalt.err (!%p750_p2)
}
   0xa   :  { %s754_s29 = scalar_lea.vmem %s21_s19, 128  ;;  %p759_p4 = scmp.lt.s32.totalorder %s21_s19, %s21_s19 }
   0xb   :  { %p755_p3 = scmp.ne.s32.totalorder %s21_s19, %s754_s29  ;;  %p760_p5 = scmp.lt.s32.totalorder %s754_s29, %s754_s29 }
   0xd   :  { %p761_p6 = por %p760_p5, %p759_p4 }
   0xf   :  { %p762_p7 = pnand %p761_p6, %p755_p3 }
  0x11   :  { %765 = shalt.err (!%p762_p7)
}
  0x12   :  { %23 = dma.hbm_to_vmem [thread:$0]  %s930_s0, 128, %s21_s19, [#allocation5]  }
  0x13   :  { %s766_s9 = scalar_lea.hbm %s931_s1, 512 }
  0x14   :  { %p767_p8 = scmp.ne.s32.totalorder %s931_s1, %s766_s9  ;;  %p770_p9 = scmp.lt.u32.totalorder %s766_s9, %s931_s1 }
  0x16   :  { %p772_p10 = pnand %p770_p9, %p767_p8 }
  0x18   :  { %775 = shalt.err (!%p772_p10)
}
  0x19   :  { %s776_s14 = scalar_lea.vmem %s854_s21, 512  ;;  %p781_p12 = scmp.lt.s32.totalorder %s854_s21, %s854_s21 }
  0x1a   :  { %p777_p11 = scmp.ne.s32.totalorder %s854_s21, %s776_s14  ;;  %p782_p13 = scmp.lt.s32.totalorder %s776_s14, %s776_s14 }
  0x1c   :  { %p783_p0 = por %p782_p13, %p781_p12 }
  0x1e   :  { %p784_p1 = pnand %p783_p0, %p777_p11 }
  0x20   :  { %787 = shalt.err (!%p784_p1)
}
  0x21   :  { %s818_s0 = smov 128   ;;  %s819_s15 = smov 8  }
  0x22   :  { %35 = dma.hbm_to_vmem [thread:$0]  %s931_s1, 512, %s854_s21, [#allocation8], %s818_s0, %s818_s0, %s819_s15  }
  0x23   :  { %810 = dma.done.wait [#allocation5], 128  }
  0x24   :  { %811 = vsyncadd [#allocation5], 4294967168 }
  0x25   :  { %812 = dma.done.wait [#allocation8], 512  }
  0x26   :  { %813 = vsyncadd [#allocation8], 4294966784  ;;  %v820_v0 = vmov 0.0|0.0   ;;  %vm821_vm0 = vmmov 0   ;;  %v822_v1 = vmov 0.0   ;;  %vm59_vm1 = vcmask 261120  }
  0x27   :  { %700 = vmatprep.subr.bf16.mxu0 %v820_v0  ;;  %706 = vmatprep.subr.bf16.mxu1 %v820_v0  ;;  %v55_v2 = vld [vmem:[#allocation7] sm:$0xff]  ;;  %v56_v3 = vld [vmem:[#allocation7 + $0x8] sm:$0xff]  ;;  %v57_v4 = vld [vmem:[#allocation7 + $0x10] sm:$0xff]  ;;  %v577_v63 = vlaneseq  ;;  %vm584_vm2 = vcmask 57344  }
  0x28   :  { %642 = vmatprep.mubr.msk.f32.mxu0 %vm821_vm0, %v822_v1  ;;  %653 = vmatprep.mubr.msk.f32.mxu1 %vm821_vm0, %v822_v1  ;;  %v64_v5 = vand.u32 4294901760, %v55_v2  ;;  %v67_v6 = vand.u32 4294901760, %v56_v3  ;;  %v58_v7 = vld [vmem:[#allocation7 + $0x18] sm:$0xff]  ;;  %v70_v8 = vand.u32 4294901760, %v57_v4 }
  0x29   :  { %v54_v9 = vld [vmem:[#allocation4] sm:$0xff]  ;;  %v73_v10 = vand.u32 4294901760, %v58_v7 }
  0x2a   :  { %v61_v11 = vsel %vm59_vm1, %v54_v9, 0  ;;  %v701_v12 = vpack.c.bf16 %v67_v6, %v64_v5  ;;  %v144_v13 = vsub.f32 %v55_v2, %v64_v5  ;;  %v151_v14 = vsub.f32 %v56_v3, %v67_v6  ;;  %v602_v56 = vld [vmem:[%s932_s2] ss:$0 sm:$0xff]  ;;  %s823_s2 = smov [#allocation9]  }
  0x2b   :  { %v158_v15 = vsub.f32 %v57_v4, %v70_v8  ;;  %v165_v16 = vsub.f32 %v58_v7, %v73_v10  ;;  %v132_v17 = vand.u32 4294901760, %v61_v11  ;;  %v704_v18 = vpack.c.bf16 %v73_v10, %v70_v8  ;;  %v603_v60 = vld [vmem:[%s933_s3] ss:$0 sm:$0xff]  ;;  %s592_s23 = sshll.u32 %s823_s2, 4  ;;  %s593_s23 = int_to_ptr.vmem [resolvable:$true] %s592_s23 }
  0x2c   :  { %702 = vmatpush3.bf16.msra.mxu0 %v701_v12  ;;  %v145_v19 = vand.u32 4294901760, %v144_v13  ;;  %v152_v20 = vand.u32 4294901760, %v151_v14  ;;  %v713_v35 = vpack.c.bf16 %v151_v14, %v144_v13  ;;  %v574_v2 = vstv %s934_s4  ;;  %s788_s3 = scalar_lea.vmem %s593_s23, 16  ;;  %s792_s24 = scalar_lea.vmem %s593_s23, 32 }
  0x2d   :  { %v159_v21 = vand.u32 4294901760, %v158_v15  ;;  %703 = vmatprep.subr.bf16.mxu0 %v820_v0  ;;  %v133_v22 = vsub.f32 %v61_v11, %v132_v17  ;;  %v166_v23 = vand.u32 4294901760, %v165_v16  ;;  %v716_v38 = vpack.c.bf16 %v165_v16, %v158_v15  ;;  %p789_p2 = scmp.ne.s32.totalorder %s593_s23, %s788_s3  ;;  %p793_p3 = scmp.lt.s32.totalorder %s593_s23, %s593_s23 }
  0x2e   :  { %v146_v24 = vsub.f32 %v144_v13, %v145_v19  ;;  %v153_v25 = vsub.f32 %v151_v14, %v152_v20  ;;  %v725_v39 = vpack.c.bf16 %v152_v20, %v145_v19  ;;  %p794_p4 = scmp.lt.s32.totalorder %s792_s24, %s788_s3 }
  0x2f   :  { %v160_v26 = vsub.f32 %v158_v15, %v159_v21  ;;  %v134_v27 = vand.u32 4294901760, %v133_v22  ;;  %v167_v28 = vsub.f32 %v165_v16, %v166_v23  ;;  %v728_v40 = vpack.c.bf16 %v166_v23, %v159_v21 }
  0x30   :  { %705 = vmatpush3.bf16.msra.mxu0 %v704_v18  ;;  %v147_v29 = vand.u32 4294901760, %v146_v24  ;;  %v154_v30 = vand.u32 4294901760, %v153_v25  ;;  %p795_p5 = por %p794_p4, %p793_p3 }
  0x31   :  { %v161_v31 = vand.u32 4294901760, %v160_v26  ;;  %712 = vmatprep.subr.bf16.mxu0 %v820_v0  ;;  %v135_v32 = vsub.f32 %v133_v22, %v134_v27  ;;  %v168_v33 = vand.u32 4294901760, %v167_v28 }
  0x32   :  { %v707_v34 = vpack.c.bf16 %v154_v30, %v147_v29  ;;  %p796_p6 = pnand %p795_p5, %p789_p2 }
  0x33   :  { %v136_v36 = vand.u32 4294901760, %v135_v32  ;;  %v710_v37 = vpack.c.bf16 %v168_v33, %v161_v31 }
  0x34   :  { %708 = vmatpush3.bf16.msra.mxu1 %v707_v34 }
  0x35   :  { %643 = vmatmul.mubr.f32.vlgmr.msra.gmra.mrb[0].mxu0 %v136_v36  ;;  %709 = vmatprep.subr.bf16.mxu1 %v820_v0 }
  0x36   :  { %714 = vmatpush3.bf16.msra.mxu0 %v713_v35  ;;  %664 = vmatprep.mubr.msk.f32.mxu0 %vm821_vm0, %v822_v1 }
  0x37   :  { %715 = vmatprep.subr.bf16.mxu0 %v820_v0 }
  0x38   :  { %711 = vmatpush3.bf16.msra.mxu1 %v710_v37 }
  0x39   :  { %718 = vmatprep.subr.bf16.mxu1 %v820_v0 }
  0x3a   :  { %717 = vmatpush3.bf16.msra.mxu0 %v716_v38 }
  0x3b   :  { %654 = vmatmul.mubr.f32.vlgmr.msra.gmra.mrb[0].mxu1 %v132_v17  ;;  %724 = vmatprep.subr.bf16.mxu0 %v820_v0 }
  0x3c   :  { %720 = vmatpush3.bf16.msra.mxu1 %v701_v12  ;;  %675 = vmatprep.mubr.msk.f32.mxu1 %vm821_vm0, %v822_v1 }
  0x3d   :  { %665 = vmatmul.mubr.f32.vlgmr.msra.gmra.mrb[2].mxu0 %v133_v22  ;;  %721 = vmatprep.subr.bf16.mxu1 %v820_v0 }
  0x3e   :  { %726 = vmatpush3.bf16.msra.mxu0 %v725_v39  ;;  %686 = vmatprep.mubr.msk.f32.mxu0 %vm821_vm0, %v822_v1 }
  0x3f   :  { %727 = vmatprep.subr.bf16.mxu0 %v820_v0 }
  0x40   :  { %723 = vmatpush3.bf16.msra.mxu1 %v704_v18 }
  0x41   :  { %730 = vmatprep.subr.bf16.mxu1 %v820_v0 }
  0x42   :  { %729 = vmatpush3.bf16.msra.mxu0 %v728_v40 }
  0x43   :  { %676 = vmatmul.mubr.f32.vlgmr.msra.gmra.mrb[2].mxu1 %v134_v27 }
  0x44   :  { %732 = vmatpush3.bf16.msra.mxu1 %v701_v12  ;;  %697 = vmatprep.mubr.msk.f32.mxu1 %vm821_vm0, %v822_v1  ;;  %v580_v1 = vshrl.u32 %v577_v63, 7 }
  0x45   :  { %687 = vmatmul.mubr.f32.vlgmr.msra.gmra.mrb[4].mxu0 %v132_v17  ;;  %733 = vmatprep.subr.bf16.mxu1 %v820_v0  ;;  %v578_v0 = vand.u32 127, %v577_v63 }
  0x47   :  { %v581_v3 = vsub.s32 %v578_v0, %v580_v1 }
  0x48   :  { %735 = vmatpush3.bf16.msra.mxu1 %v704_v18 }
  0x4b   :  { %698 = vmatmul.mubr.f32.vlgmr.msra.gmra.mrb[4].mxu1 %v132_v17 }
 0x108   :  { %v138_v41 = vpop.f32.mrb[0].mxu0 }
 0x109   :  { %v644_v42 = vpop.f32.mrb[1].mxu0 }
 0x10e   :  { %v229_v43 = vpop.f32.mrb[0].mxu1 }
 0x10f   :  { %v230_v44 = vadd.f32 %v229_v43, %v138_v41  ;;  %v655_v45 = vpop.f32.mrb[1].mxu1 }
 0x110   :  { %v309_v46 = vpop.f32.mrb[2].mxu0 }
 0x111   :  { %v310_v47 = vadd.f32 %v309_v46, %v230_v44  ;;  %v666_v48 = vpop.f32.mrb[3].mxu0 }
 0x116   :  { %v386_v49 = vpop.f32.mrb[2].mxu1 }
 0x117   :  { %v387_v50 = vadd.f32 %v386_v49, %v310_v47  ;;  %v677_v51 = vpop.f32.mrb[3].mxu1 }
 0x118   :  { %v469_v52 = vpop.f32.mrb[4].mxu0 }
 0x119   :  { %v470_v53 = vadd.f32 %v469_v52, %v387_v50  ;;  %v688_v54 = vpop.f32.mrb[5].mxu0 }
 0x11e   :  { %v544_v55 = vpop.f32.mrb[4].mxu1 }
 0x11f   :  { %v545_v57 = vadd.f32 %v544_v55, %v470_v53  ;;  %v699_v58 = vpop.f32.mrb[5].mxu1 }
 0x121   :  { %v561_v59 = vadd.f32 %v602_v56, %v545_v57 }
 0x123   :  { %v562_v61 = vmax.f32 %v561_v59, 0.0 }
 0x125   :  { %v570_v62 = vmul.f32 %v603_v60, %v562_v61 }
 0x127   :  { %571 = vadd.xlane.f32.xlu0 %v570_v62 }
 0x1b4   :  { %v572_v4 = vpop.xlane.xlu0 %571 }
 0x1b5   :  { %v575_v5 = vadd.f32 %v574_v2, %v572_v4 }
 0x1b7   :  { %v582_v6 = vrot.slane %v575_v5, %v581_v3 }
 0x1b9   :  { %585 = vst.msk [vmem:[#allocation9] sm:$0x1] %vm584_vm2, %v582_v6 }
 0x1ba   :  { %799 = shalt.err (!%p796_p6)
}
 0x1bb   :  { %s800_s4 = scalar_lea.hbm %s935_s5, 16 }
 0x1bc   :  { %p801_p7 = scmp.ne.s32.totalorder %s935_s5, %s800_s4  ;;  %p804_p8 = scmp.lt.u32.totalorder %s800_s4, %s935_s5 }
 0x1be   :  { %p806_p9 = pnand %p804_p8, %p801_p7 }
 0x1c0   :  { %809 = shalt.err (!%p806_p9)
}
 0x1c1   :  { %595 = dma.vmem_to_hbm [thread:$0]  %s593_s23, 16, %s935_s5, [#allocation6]  }
 0x1c2   :  { %814 = dma.done.wait [#allocation6], 16  }
 0x1c3   :  { %815 = vsyncadd [#allocation6], 4294967280 }
 0x1c4   :  { %599 = vsyncpa [#allocation5], 1 }
 0x1c5   :  { %600 = vsyncpa [#allocation8], 1 }
 0x1c6   :  { %601 = vsyncpa [#allocation6], 1 }

</bundles_post_ra>
